<compile_context>
chip_gen: v7x
topology: tpu7x:2x2x1
jax: 0.10.0
libtpu: 0.0.40
codegen_flags: <defaults>
</compile_context>

<pallas_src>
import jax
import jax.numpy as jnp
from jax.experimental import pallas as pl
from jax.experimental.pallas import tpu as pltpu


def _round_up(x, m):
    return ((x + m - 1) // m) * m


def _fast_recip(x):
    # EUP approximate reciprocal + one Newton-Raphson step (f32-accurate, no divide).
    r = pl.reciprocal(x, approx=True)
    return r * (2.0 - x * r)


def _softmax_row(logits):
    m = jnp.max(logits, axis=1, keepdims=True)
    e = jnp.exp(logits - m)
    return e * _fast_recip(jnp.sum(e, axis=1, keepdims=True))


def attn_decoder_kernel(ids_ref,        # SMEM int32 (L,)          scalar-prefetch token ids
                        hist_ref,       # f32  (1, V)              history record
                        hid_ref,        # f32  (1, H)              previous GRU hidden
                        enc_ref,        # bf16 (M, H)              encoder outputs
                        w_attn_ref,     # bf16 (2H, M)             [emb rows | hidden rows]
                        w_gru_ref,      # bf16 (2H, GRUW)          [W_ih^T | W_hh^T], 3H padded to GRUW
                        w_small_ref,    # bf16 (V + 2H, SMALLW)    [emb table | comb_w(emb) | comb_w(attn)], H padded
                        w_out_ref,      # bf16 (H + V, V)          [out_w | ac5_w]
                        bias_ref,       # f32  (6, BW)             [attn_b, comb_b, bih, bhh, out_b, ac5_b]
                        o_ref):         # f32  (3, OUTW)           row0 softmax out, row1 hidden, row2 attn_w
    f32, bf16 = jnp.float32, jnp.bfloat16
    V = hist_ref.shape[1]
    H = hid_ref.shape[1]
    M = enc_ref.shape[0]
    GRUW = w_gru_ref.shape[1]
    SMALLW = w_small_ref.shape[1]
    L = ids_ref.shape[0]

    hist = hist_ref[...]                       # f32 (1, V)
    hidden = hid_ref[...]                      # f32 (1, H)
    hid_bf = hidden.astype(bf16)

    # --- counts / L multi-hot row built from prefetched ids (no gather, no wrapper scatter) ---
    col = jax.lax.broadcasted_iota(jnp.int32, (1, V), 1)
    counts = jnp.zeros((1, V), f32)
    for l in range(L):                         # static unroll, L is tiny
        counts = counts + (col == ids_ref[l]).astype(f32)
    counts = counts * (1.0 / L)

    # --- averaged embedding: one bf16 MXU pass over the multi-hot row ---
    emb_full = jnp.dot(counts.astype(bf16), w_small_ref[0:V, :],
                       preferred_element_type=f32)                         # (1, SMALLW)
    emb = emb_full[:, 0:H]                                                 # (1, H) f32
    emb_bf = emb.astype(bf16)

    # --- attention weights (split-concat matmul, bf16 weights direct to MXU) ---
    attn_logits = (jnp.dot(emb_bf, w_attn_ref[0:H, :], preferred_element_type=f32)
                   + jnp.dot(hid_bf, w_attn_ref[H:2 * H, :], preferred_element_type=f32)
                   + bias_ref[0:1, 0:M])                                   # (1, M)
    attn_w = _softmax_row(attn_logits)

    attn_applied = jnp.dot(attn_w.astype(bf16), enc_ref[...],
                           preferred_element_type=f32)                     # (1, H)

    # --- attn_combine + relu (split-concat matmul) ---
    x_full = (jnp.dot(emb_bf, w_small_ref[V:V + H, :], preferred_element_type=f32)
              + jnp.dot(attn_applied.astype(bf16), w_small_ref[V + H:V + 2 * H, :],
                        preferred_element_type=f32)
              + bias_ref[1:2, 0:SMALLW])
    x = jnp.maximum(x_full[:, 0:H], 0.0)                                   # (1, H)

    # --- single-step GRU (PyTorch gate order r, z, n); padded lanes carry zeros ---
    gi = jnp.dot(x.astype(bf16), w_gru_ref[0:H, :],
                 preferred_element_type=f32) + bias_ref[2:3, 0:GRUW]
    gh = jnp.dot(hid_bf, w_gru_ref[H:2 * H, :],
                 preferred_element_type=f32) + bias_ref[3:4, 0:GRUW]
    rz = jax.nn.sigmoid(gi[:, 0:2 * H] + gh[:, 0:2 * H])                   # r|z in one sigmoid
    r = rz[:, 0:H]
    z = rz[:, H:2 * H]
    n = jnp.tanh(gi[:, 2 * H:3 * H] + r * gh[:, 2 * H:3 * H])
    h_new = (1.0 - z) * n + z * hidden                                     # (1, H) f32

    # --- output projection + fused history gating + softmax ---
    lin = jnp.dot(h_new.astype(bf16), w_out_ref[0:H, :],
                  preferred_element_type=f32) + bias_ref[4:5, 0:V]         # (1, V)
    value = jax.nn.sigmoid(
        jnp.dot(hist.astype(bf16), w_out_ref[H:H + V, :],
                preferred_element_type=f32) + bias_ref[5:6, 0:V])          # (1, V)
    logits = jnp.where(hist != 0.0, lin * (1.0 - value) + hist * value, lin)
    out_sm = _softmax_row(logits)

    # --- single lane-dense output slab (one epilogue writeback DMA) ---
    o_ref[...] = jnp.zeros_like(o_ref)
    o_ref[0:1, 0:V] = out_sm
    o_ref[1:2, 0:H] = h_new
    o_ref[2:3, 0:M] = attn_w


def pack_params(params):
    """One-time packing of model weights into a few bf16/f32, 128-lane-padded slabs."""
    f32, bf16 = jnp.float32, jnp.bfloat16
    V, H = params["emb"].shape
    M = params["attn_w"].shape[1]
    # TODO(synk): general (non-128-aligned) V / M would need masked softmax lanes.
    assert V % 128 == 0 and M % 128 == 0, "output_size and max_length must be 128-aligned"

    GRUW = _round_up(3 * H, 128)
    SMALLW = _round_up(H, 128)
    BW = max(M, V, GRUW, SMALLW)

    def pad_last(w, width):
        return jnp.pad(w, ((0, 0), (0, width - w.shape[1])))

    def pad_bias(b):
        b = b.reshape(1, -1).astype(f32)
        return jnp.pad(b, ((0, 0), (0, BW - b.shape[1])))

    return {
        "w_attn":  params["attn_w"].astype(bf16),                                           # (2H, M)
        "w_gru":   pad_last(jnp.concatenate([params["wih"], params["whh"]], 0),
                            GRUW).astype(bf16),                                             # (2H, GRUW)
        "w_small": pad_last(jnp.concatenate([params["emb"], params["comb_w"]], 0),
                            SMALLW).astype(bf16),                                           # (V+2H, SMALLW)
        "w_out":   jnp.concatenate([params["out_w"], params["ac5_w"]], 0).astype(bf16),     # (H+V, V)
        "biases":  jnp.concatenate([pad_bias(params["attn_b"]), pad_bias(params["comb_b"]),
                                    pad_bias(params["bih"]), pad_bias(params["bhh"]),
                                    pad_bias(params["out_b"]), pad_bias(params["ac5_b"])], 0),  # (6, BW)
    }


def attn_decoder_step(packed, ids, hidden, encoder_outputs, history_record):
    """ids: int32[L]; hidden: (1,1,H); encoder_outputs: (M,H); history_record: (1,V)."""
    f32, bf16 = jnp.float32, jnp.bfloat16
    H = hidden.shape[-1]
    M = encoder_outputs.shape[0]
    V = history_record.shape[-1]
    OUTW = max(_round_up(M, 128), _round_up(V, 128), 128)

    operands = [history_record.astype(f32),          # (1, V)
                hidden.reshape(1, H).astype(f32),    # (1, H)
                encoder_outputs.astype(bf16),        # (M, H) bf16
                packed["w_attn"], packed["w_gru"], packed["w_small"],
                packed["w_out"], packed["biases"]]

    in_specs = [pl.BlockSpec(a.shape, lambda i, ids_ref, nd=a.ndim: (0,) * nd)
                for a in operands]
    out_spec = pl.BlockSpec((3, OUTW), lambda i, ids_ref: (0, 0))

    grid_spec = pltpu.PrefetchScalarGridSpec(
        num_scalar_prefetch=1,          # ids -> SMEM
        grid=(1,),
        in_specs=in_specs,
        out_specs=out_spec,
    )

    slab = pl.pallas_call(
        attn_decoder_kernel,
        grid_spec=grid_spec,
        out_shape=jax.ShapeDtypeStruct((3, OUTW), f32),
        compiler_params=pltpu.CompilerParams(
            dimension_semantics=("arbitrary",)),
    )(ids.astype(jnp.int32), *operands)

    out = slab[0:1, 0:V]
    h_new = slab[1:2, 0:H].reshape(1, 1, H)
    attn_w = slab[2:3, 0:M]
    # match PyTorch return shapes: (1, V), (num_layers=1, 1, H), (1, M)
    return out, h_new, attn_w


def reference_forward(ids, p, hidden, enc, hist):
    """Pure-JAX reference mirroring the kernel's precision policy (bf16 matmul
    operands, f32 accumulation / elementwise)."""
    f32 = jnp.float32
    rbf = lambda x: x.astype(jnp.bfloat16).astype(f32)   # round-trip through bf16
    H = hidden.shape[-1]
    hidden2d = hidden.reshape(1, H)

    emb = jnp.mean(rbf(p["emb"])[ids], axis=0, keepdims=True)
    aw = jax.nn.softmax(rbf(jnp.concatenate([emb, hidden2d], 1)) @ rbf(p["attn_w"])
                        + p["attn_b"], axis=1)
    applied = rbf(aw) @ rbf(enc)
    x = jnp.maximum(rbf(jnp.concatenate([emb, applied], 1)) @ rbf(p["comb_w"])
                    + p["comb_b"], 0.0)
    gi = rbf(x) @ rbf(p["wih"]) + p["bih"]
    gh = rbf(hidden2d) @ rbf(p["whh"]) + p["bhh"]
    r = jax.nn.sigmoid(gi[:, :H] + gh[:, :H])
    z = jax.nn.sigmoid(gi[:, H:2 * H] + gh[:, H:2 * H])
    n = jnp.tanh(gi[:, 2 * H:] + r * gh[:, 2 * H:])
    h_new = (1.0 - z) * n + z * hidden2d
    lin = rbf(h_new) @ rbf(p["out_w"]) + p["out_b"]
    value = jax.nn.sigmoid(rbf(hist) @ rbf(p["ac5_w"]) + p["ac5_b"])
    res = (hist != 0).astype(f32)
    out = jax.nn.softmax(lin * (1.0 - res * value) + hist * value, axis=1)
    return out, h_new.reshape(1, 1, H), aw


if __name__ == "__main__":
    H = 32       # hidden_size
    V = 128      # output_size (vocab)
    M = 256      # max_length
    L = 8        # number of input token ids

    key = jax.random.PRNGKey(0)
    ks = jax.random.split(key, 16)
    s = 0.1
    params = {
        "emb":    jax.random.normal(ks[0], (V, H), jnp.float32) * s,
        "attn_w": jax.random.normal(ks[1], (2 * H, M), jnp.float32) * s,
        "attn_b": jax.random.normal(ks[2], (1, M), jnp.float32) * s,
        "comb_w": jax.random.normal(ks[3], (2 * H, H), jnp.float32) * s,
        "comb_b": jax.random.normal(ks[4], (1, H), jnp.float32) * s,
        "wih":    jax.random.normal(ks[5], (H, 3 * H), jnp.float32) * s,
        "bih":    jax.random.normal(ks[6], (1, 3 * H), jnp.float32) * s,
        "whh":    jax.random.normal(ks[7], (H, 3 * H), jnp.float32) * s,
        "bhh":    jax.random.normal(ks[8], (1, 3 * H), jnp.float32) * s,
        "out_w":  jax.random.normal(ks[9], (H, V), jnp.float32) * s,
        "out_b":  jax.random.normal(ks[10], (1, V), jnp.float32) * s,
        "ac5_w":  jax.random.normal(ks[11], (V, V), jnp.float32) * s,
        "ac5_b":  jax.random.normal(ks[12], (1, V), jnp.float32) * s,
    }

    ids = jax.random.randint(ks[13], (L,), 0, V, jnp.int32)
    hidden = jax.random.normal(ks[14], (1, 1, H), jnp.float32) * s
    encoder_outputs = jax.random.normal(ks[15], (M, H), jnp.float32) * s
    hk = jax.random.split(ks[13], 2)
    hist_vals = jax.random.normal(hk[0], (1, V), jnp.float32)
    hist_mask = jax.random.bernoulli(hk[1], 0.3, (1, V))
    history_record = jnp.where(hist_mask, hist_vals, 0.0)

    packed = pack_params(params)            # one-time weight packing / bf16 cast / lane padding
    step = jax.jit(attn_decoder_step)

    out, h_new, attn_w = step(packed, ids, hidden, encoder_outputs, history_record)
    jax.block_until_ready((out, h_new, attn_w))

    ref_out, ref_h, ref_aw = reference_forward(ids, params, hidden,
                                               encoder_outputs, history_record)
    assert jnp.allclose(out, ref_out, atol=3e-4, rtol=3e-4)
    assert jnp.allclose(h_new, ref_h, atol=3e-4, rtol=3e-4)
    assert jnp.allclose(attn_w, ref_aw, atol=3e-4, rtol=3e-4)

    print("KERNEL_OK")
</pallas_src>

<mosaic_0001>
module attributes {stable_mosaic.version = 11 : i64} {
  func.func @attn_decoder_kernel(%arg0: i32, %arg1: memref<8xi32, #tpu.memory_space<smem>>, %arg2: memref<1x128xf32, #tpu.memory_space<vmem>>, %arg3: memref<1x32xf32, #tpu.memory_space<vmem>>, %arg4: memref<256x32xbf16, #tpu.memory_space<vmem>>, %arg5: memref<64x256xbf16, #tpu.memory_space<vmem>>, %arg6: memref<64x128xbf16, #tpu.memory_space<vmem>>, %arg7: memref<192x128xbf16, #tpu.memory_space<vmem>>, %arg8: memref<160x128xbf16, #tpu.memory_space<vmem>>, %arg9: memref<6x256xf32, #tpu.memory_space<vmem>>, %arg10: memref<3x256xf32, #tpu.memory_space<vmem>>) attributes {dimension_semantics = [#tpu.dimension_semantics<arbitrary>], iteration_bounds = array<i64: 1>, scalar_prefetch = 1 : i64, scratch_operands = 0 : i64, tpu.core_type = #tpu.core_type<tc>, window_params = [{pipeline_mode = #tpu.pipeline_mode<synchronous>, transform_indices = @transform_0, window_bounds = array<i64: 1, 128>}, {pipeline_mode = #tpu.pipeline_mode<synchronous>, transform_indices = @transform_1, window_bounds = array<i64: 1, 32>}, {pipeline_mode = #tpu.pipeline_mode<synchronous>, transform_indices = @transform_2, window_bounds = array<i64: 256, 32>}, {pipeline_mode = #tpu.pipeline_mode<synchronous>, transform_indices = @transform_3, window_bounds = array<i64: 64, 256>}, {pipeline_mode = #tpu.pipeline_mode<synchronous>, transform_indices = @transform_4, window_bounds = array<i64: 64, 128>}, {pipeline_mode = #tpu.pipeline_mode<synchronous>, transform_indices = @transform_5, window_bounds = array<i64: 192, 128>}, {pipeline_mode = #tpu.pipeline_mode<synchronous>, transform_indices = @transform_6, window_bounds = array<i64: 160, 128>}, {pipeline_mode = #tpu.pipeline_mode<synchronous>, transform_indices = @transform_7, window_bounds = array<i64: 6, 256>}, {pipeline_mode = #tpu.pipeline_mode<synchronous>, transform_indices = @transform_8, window_bounds = array<i64: 3, 256>}]} {
    %c0 = arith.constant 0 : index
    %c0_0 = arith.constant 0 : index
    %0 = vector.load %arg2[%c0, %c0_0] : memref<1x128xf32, #tpu.memory_space<vmem>>, vector<1x128xf32>
    %c0_1 = arith.constant 0 : index
    %c0_2 = arith.constant 0 : index
    %1 = vector.load %arg3[%c0_1, %c0_2] : memref<1x32xf32, #tpu.memory_space<vmem>>, vector<1x32xf32>
    %2 = arith.truncf %1 : vector<1x32xf32> to vector<1x32xbf16>
    %3 = tpu.iota {dimensions = array<i32: 1>} : vector<1x128xi32>
    %cst = arith.constant 0.000000e+00 : f32
    %4 = vector.broadcast %cst : f32 to vector<1x128xf32>
    %c0_3 = arith.constant 0 : index
    %5 = memref.load %arg1[%c0_3] : memref<8xi32, #tpu.memory_space<smem>>
    %6 = vector.broadcast %5 : i32 to vector<1x128xi32>
    %7 = arith.cmpi eq, %3, %6 : vector<1x128xi32>
    %8 = arith.extui %7 : vector<1x128xi1> to vector<1x128xi32>
    %9 = arith.sitofp %8 : vector<1x128xi32> to vector<1x128xf32>
    %10 = arith.addf %4, %9 : vector<1x128xf32>
    %c1 = arith.constant 1 : index
    %11 = memref.load %arg1[%c1] : memref<8xi32, #tpu.memory_space<smem>>
    %12 = vector.broadcast %11 : i32 to vector<1x128xi32>
    %13 = arith.cmpi eq, %3, %12 : vector<1x128xi32>
    %14 = arith.extui %13 : vector<1x128xi1> to vector<1x128xi32>
    %15 = arith.sitofp %14 : vector<1x128xi32> to vector<1x128xf32>
    %16 = arith.addf %10, %15 : vector<1x128xf32>
    %c2 = arith.constant 2 : index
    %17 = memref.load %arg1[%c2] : memref<8xi32, #tpu.memory_space<smem>>
    %18 = vector.broadcast %17 : i32 to vector<1x128xi32>
    %19 = arith.cmpi eq, %3, %18 : vector<1x128xi32>
    %20 = arith.extui %19 : vector<1x128xi1> to vector<1x128xi32>
    %21 = arith.sitofp %20 : vector<1x128xi32> to vector<1x128xf32>
    %22 = arith.addf %16, %21 : vector<1x128xf32>
    %c3 = arith.constant 3 : index
    %23 = memref.load %arg1[%c3] : memref<8xi32, #tpu.memory_space<smem>>
    %24 = vector.broadcast %23 : i32 to vector<1x128xi32>
    %25 = arith.cmpi eq, %3, %24 : vector<1x128xi32>
    %26 = arith.extui %25 : vector<1x128xi1> to vector<1x128xi32>
    %27 = arith.sitofp %26 : vector<1x128xi32> to vector<1x128xf32>
    %28 = arith.addf %22, %27 : vector<1x128xf32>
    %c4 = arith.constant 4 : index
    %29 = memref.load %arg1[%c4] : memref<8xi32, #tpu.memory_space<smem>>
    %30 = vector.broadcast %29 : i32 to vector<1x128xi32>
    %31 = arith.cmpi eq, %3, %30 : vector<1x128xi32>
    %32 = arith.extui %31 : vector<1x128xi1> to vector<1x128xi32>
    %33 = arith.sitofp %32 : vector<1x128xi32> to vector<1x128xf32>
    %34 = arith.addf %28, %33 : vector<1x128xf32>
    %c5 = arith.constant 5 : index
    %35 = memref.load %arg1[%c5] : memref<8xi32, #tpu.memory_space<smem>>
    %36 = vector.broadcast %35 : i32 to vector<1x128xi32>
    %37 = arith.cmpi eq, %3, %36 : vector<1x128xi32>
    %38 = arith.extui %37 : vector<1x128xi1> to vector<1x128xi32>
    %39 = arith.sitofp %38 : vector<1x128xi32> to vector<1x128xf32>
    %40 = arith.addf %34, %39 : vector<1x128xf32>
    %c6 = arith.constant 6 : index
    %41 = memref.load %arg1[%c6] : memref<8xi32, #tpu.memory_space<smem>>
    %42 = vector.broadcast %41 : i32 to vector<1x128xi32>
    %43 = arith.cmpi eq, %3, %42 : vector<1x128xi32>
    %44 = arith.extui %43 : vector<1x128xi1> to vector<1x128xi32>
    %45 = arith.sitofp %44 : vector<1x128xi32> to vector<1x128xf32>
    %46 = arith.addf %40, %45 : vector<1x128xf32>
    %c7 = arith.constant 7 : index
    %47 = memref.load %arg1[%c7] : memref<8xi32, #tpu.memory_space<smem>>
    %48 = vector.broadcast %47 : i32 to vector<1x128xi32>
    %49 = arith.cmpi eq, %3, %48 : vector<1x128xi32>
    %50 = arith.extui %49 : vector<1x128xi1> to vector<1x128xi32>
    %51 = arith.sitofp %50 : vector<1x128xi32> to vector<1x128xf32>
    %52 = arith.addf %46, %51 : vector<1x128xf32>
    %cst_4 = arith.constant 1.250000e-01 : f32
    %53 = vector.broadcast %cst_4 : f32 to vector<1x128xf32>
    %54 = arith.mulf %52, %53 : vector<1x128xf32>
    %55 = arith.truncf %54 : vector<1x128xf32> to vector<1x128xbf16>
    %c0_5 = arith.constant 0 : index
    %c0_6 = arith.constant 0 : index
    %56 = vector.load %arg7[%c0_5, %c0_6] : memref<192x128xbf16, #tpu.memory_space<vmem>>, vector<128x128xbf16>
    %cst_7 = arith.constant dense<0.000000e+00> : vector<1x128xf32>
    %57 = tpu.matmul %55, %56, %cst_7 {dimension_numbers = #tpu.dot_dimension_numbers<[1], [0], [0], [1], [0, 0, 1, 1], [], []>} : vector<1x128xbf16>, vector<128x128xbf16>, vector<1x128xf32> -> vector<1x128xf32>
    %58 = vector.extract_strided_slice %57 {offsets = [0, 0], sizes = [1, 32], strides = [1, 1]} : vector<1x128xf32> to vector<1x32xf32>
    %59 = arith.truncf %58 : vector<1x32xf32> to vector<1x32xbf16>
    %c0_8 = arith.constant 0 : index
    %c0_9 = arith.constant 0 : index
    %60 = vector.load %arg5[%c0_8, %c0_9] : memref<64x256xbf16, #tpu.memory_space<vmem>>, vector<32x256xbf16>
    %cst_10 = arith.constant dense<0.000000e+00> : vector<1x256xf32>
    %61 = tpu.matmul %59, %60, %cst_10 {dimension_numbers = #tpu.dot_dimension_numbers<[1], [0], [0], [1], [0, 0, 1, 1], [], []>} : vector<1x32xbf16>, vector<32x256xbf16>, vector<1x256xf32> -> vector<1x256xf32>
    %c32 = arith.constant 32 : index
    %c0_11 = arith.constant 0 : index
    %62 = vector.load %arg5[%c32, %c0_11] : memref<64x256xbf16, #tpu.memory_space<vmem>>, vector<32x256xbf16>
    %cst_12 = arith.constant dense<0.000000e+00> : vector<1x256xf32>
    %63 = tpu.matmul %2, %62, %cst_12 {dimension_numbers = #tpu.dot_dimension_numbers<[1], [0], [0], [1], [0, 0, 1, 1], [], []>} : vector<1x32xbf16>, vector<32x256xbf16>, vector<1x256xf32> -> vector<1x256xf32>
    %64 = arith.addf %61, %63 : vector<1x256xf32>
    %c0_13 = arith.constant 0 : index
    %c0_14 = arith.constant 0 : index
    %65 = vector.load %arg9[%c0_13, %c0_14] : memref<6x256xf32, #tpu.memory_space<vmem>>, vector<1x256xf32>
    %66 = arith.addf %64, %65 : vector<1x256xf32>
    %cst_15 = arith.constant dense<0xFF800000> : vector<1xf32>
    %67 = vector.multi_reduction <maximumf>, %66, %cst_15 [1] : vector<1x256xf32> to vector<1xf32>
    %68 = vector.shape_cast %67 : vector<1xf32> to vector<1x1xf32>
    %69 = vector.broadcast %68 : vector<1x1xf32> to vector<1x256xf32>
    %70 = arith.subf %66, %69 : vector<1x256xf32>
    %71 = math.exp %70 : vector<1x256xf32>
    %cst_16 = arith.constant dense<0.000000e+00> : vector<1xf32>
    %72 = vector.multi_reduction <add>, %71, %cst_16 [1] : vector<1x256xf32> to vector<1xf32>
    %73 = vector.shape_cast %72 : vector<1xf32> to vector<1x1xf32>
    %74 = tpu.reciprocal %73 {approx = true} : vector<1x1xf32> -> vector<1x1xf32>
    %75 = arith.mulf %73, %74 : vector<1x1xf32>
    %cst_17 = arith.constant 2.000000e+00 : f32
    %76 = vector.broadcast %cst_17 : f32 to vector<1x1xf32>
    %77 = arith.subf %76, %75 : vector<1x1xf32>
    %78 = arith.mulf %74, %77 : vector<1x1xf32>
    %79 = vector.broadcast %78 : vector<1x1xf32> to vector<1x256xf32>
    %80 = arith.mulf %71, %79 : vector<1x256xf32>
    %81 = arith.truncf %80 : vector<1x256xf32> to vector<1x256xbf16>
    %c0_18 = arith.constant 0 : index
    %c0_19 = arith.constant 0 : index
    %82 = vector.load %arg4[%c0_18, %c0_19] : memref<256x32xbf16, #tpu.memory_space<vmem>>, vector<256x32xbf16>
    %cst_20 = arith.constant dense<0.000000e+00> : vector<1x32xf32>
    %83 = tpu.matmul %81, %82, %cst_20 {dimension_numbers = #tpu.dot_dimension_numbers<[1], [0], [0], [1], [0, 0, 1, 1], [], []>} : vector<1x256xbf16>, vector<256x32xbf16>, vector<1x32xf32> -> vector<1x32xf32>
    %c128 = arith.constant 128 : index
    %c0_21 = arith.constant 0 : index
    %84 = vector.load %arg7[%c128, %c0_21] : memref<192x128xbf16, #tpu.memory_space<vmem>>, vector<32x128xbf16>
    %cst_22 = arith.constant dense<0.000000e+00> : vector<1x128xf32>
    %85 = tpu.matmul %59, %84, %cst_22 {dimension_numbers = #tpu.dot_dimension_numbers<[1], [0], [0], [1], [0, 0, 1, 1], [], []>} : vector<1x32xbf16>, vector<32x128xbf16>, vector<1x128xf32> -> vector<1x128xf32>
    %86 = arith.truncf %83 : vector<1x32xf32> to vector<1x32xbf16>
    %c160 = arith.constant 160 : index
    %c0_23 = arith.constant 0 : index
    %87 = vector.load %arg7[%c160, %c0_23] : memref<192x128xbf16, #tpu.memory_space<vmem>>, vector<32x128xbf16>
    %cst_24 = arith.constant dense<0.000000e+00> : vector<1x128xf32>
    %88 = tpu.matmul %86, %87, %cst_24 {dimension_numbers = #tpu.dot_dimension_numbers<[1], [0], [0], [1], [0, 0, 1, 1], [], []>} : vector<1x32xbf16>, vector<32x128xbf16>, vector<1x128xf32> -> vector<1x128xf32>
    %89 = arith.addf %85, %88 : vector<1x128xf32>
    %c1_25 = arith.constant 1 : index
    %c0_26 = arith.constant 0 : index
    %90 = vector.load %arg9[%c1_25, %c0_26] : memref<6x256xf32, #tpu.memory_space<vmem>>, vector<1x128xf32>
    %91 = arith.addf %89, %90 : vector<1x128xf32>
    %92 = vector.extract_strided_slice %91 {offsets = [0, 0], sizes = [1, 32], strides = [1, 1]} : vector<1x128xf32> to vector<1x32xf32>
    %cst_27 = arith.constant 0.000000e+00 : f32
    %93 = vector.broadcast %cst_27 : f32 to vector<1x32xf32>
    %94 = arith.maximumf %92, %93 : vector<1x32xf32>
    %95 = arith.truncf %94 : vector<1x32xf32> to vector<1x32xbf16>
    %c0_28 = arith.constant 0 : index
    %c0_29 = arith.constant 0 : index
    %96 = vector.load %arg6[%c0_28, %c0_29] : memref<64x128xbf16, #tpu.memory_space<vmem>>, vector<32x128xbf16>
    %cst_30 = arith.constant dense<0.000000e+00> : vector<1x128xf32>
    %97 = tpu.matmul %95, %96, %cst_30 {dimension_numbers = #tpu.dot_dimension_numbers<[1], [0], [0], [1], [0, 0, 1, 1], [], []>} : vector<1x32xbf16>, vector<32x128xbf16>, vector<1x128xf32> -> vector<1x128xf32>
    %c2_31 = arith.constant 2 : index
    %c0_32 = arith.constant 0 : index
    %98 = vector.load %arg9[%c2_31, %c0_32] : memref<6x256xf32, #tpu.memory_space<vmem>>, vector<1x128xf32>
    %99 = arith.addf %97, %98 : vector<1x128xf32>
    %c32_33 = arith.constant 32 : index
    %c0_34 = arith.constant 0 : index
    %100 = vector.load %arg6[%c32_33, %c0_34] : memref<64x128xbf16, #tpu.memory_space<vmem>>, vector<32x128xbf16>
    %cst_35 = arith.constant dense<0.000000e+00> : vector<1x128xf32>
    %101 = tpu.matmul %2, %100, %cst_35 {dimension_numbers = #tpu.dot_dimension_numbers<[1], [0], [0], [1], [0, 0, 1, 1], [], []>} : vector<1x32xbf16>, vector<32x128xbf16>, vector<1x128xf32> -> vector<1x128xf32>
    %c3_36 = arith.constant 3 : index
    %c0_37 = arith.constant 0 : index
    %102 = vector.load %arg9[%c3_36, %c0_37] : memref<6x256xf32, #tpu.memory_space<vmem>>, vector<1x128xf32>
    %103 = arith.addf %101, %102 : vector<1x128xf32>
    %104 = vector.extract_strided_slice %99 {offsets = [0, 0], sizes = [1, 64], strides = [1, 1]} : vector<1x128xf32> to vector<1x64xf32>
    %105 = vector.extract_strided_slice %103 {offsets = [0, 0], sizes = [1, 64], strides = [1, 1]} : vector<1x128xf32> to vector<1x64xf32>
    %106 = arith.addf %104, %105 : vector<1x64xf32>
    %107 = arith.negf %106 : vector<1x64xf32>
    %108 = math.exp %107 : vector<1x64xf32>
    %cst_38 = arith.constant 1.000000e+00 : f32
    %109 = vector.broadcast %cst_38 : f32 to vector<1x64xf32>
    %110 = arith.addf %109, %108 : vector<1x64xf32>
    %111 = arith.divf %109, %110 : vector<1x64xf32>
    %112 = vector.extract_strided_slice %111 {offsets = [0, 0], sizes = [1, 32], strides = [1, 1]} : vector<1x64xf32> to vector<1x32xf32>
    %113 = vector.extract_strided_slice %111 {offsets = [0, 32], sizes = [1, 32], strides = [1, 1]} : vector<1x64xf32> to vector<1x32xf32>
    %114 = vector.extract_strided_slice %99 {offsets = [0, 64], sizes = [1, 32], strides = [1, 1]} : vector<1x128xf32> to vector<1x32xf32>
    %115 = vector.extract_strided_slice %103 {offsets = [0, 64], sizes = [1, 32], strides = [1, 1]} : vector<1x128xf32> to vector<1x32xf32>
    %116 = arith.mulf %112, %115 : vector<1x32xf32>
    %117 = arith.addf %114, %116 : vector<1x32xf32>
    %118 = math.tanh %117 : vector<1x32xf32>
    %cst_39 = arith.constant 1.000000e+00 : f32
    %119 = vector.broadcast %cst_39 : f32 to vector<1x32xf32>
    %120 = arith.subf %119, %113 : vector<1x32xf32>
    %121 = arith.mulf %120, %118 : vector<1x32xf32>
    %122 = arith.mulf %113, %1 : vector<1x32xf32>
    %123 = arith.addf %121, %122 : vector<1x32xf32>
    %124 = arith.truncf %123 : vector<1x32xf32> to vector<1x32xbf16>
    %c0_40 = arith.constant 0 : index
    %c0_41 = arith.constant 0 : index
    %125 = vector.load %arg8[%c0_40, %c0_41] : memref<160x128xbf16, #tpu.memory_space<vmem>>, vector<32x128xbf16>
    %cst_42 = arith.constant dense<0.000000e+00> : vector<1x128xf32>
    %126 = tpu.matmul %124, %125, %cst_42 {dimension_numbers = #tpu.dot_dimension_numbers<[1], [0], [0], [1], [0, 0, 1, 1], [], []>} : vector<1x32xbf16>, vector<32x128xbf16>, vector<1x128xf32> -> vector<1x128xf32>
    %c4_43 = arith.constant 4 : index
    %c0_44 = arith.constant 0 : index
    %127 = vector.load %arg9[%c4_43, %c0_44] : memref<6x256xf32, #tpu.memory_space<vmem>>, vector<1x128xf32>
    %128 = arith.addf %126, %127 : vector<1x128xf32>
    %129 = arith.truncf %0 : vector<1x128xf32> to vector<1x128xbf16>
    %c32_45 = arith.constant 32 : index
    %c0_46 = arith.constant 0 : index
    %130 = vector.load %arg8[%c32_45, %c0_46] : memref<160x128xbf16, #tpu.memory_space<vmem>>, vector<128x128xbf16>
    %cst_47 = arith.constant dense<0.000000e+00> : vector<1x128xf32>
    %131 = tpu.matmul %129, %130, %cst_47 {dimension_numbers = #tpu.dot_dimension_numbers<[1], [0], [0], [1], [0, 0, 1, 1], [], []>} : vector<1x128xbf16>, vector<128x128xbf16>, vector<1x128xf32> -> vector<1x128xf32>
    %c5_48 = arith.constant 5 : index
    %c0_49 = arith.constant 0 : index
    %132 = vector.load %arg9[%c5_48, %c0_49] : memref<6x256xf32, #tpu.memory_space<vmem>>, vector<1x128xf32>
    %133 = arith.addf %131, %132 : vector<1x128xf32>
    %134 = arith.negf %133 : vector<1x128xf32>
    %135 = math.exp %134 : vector<1x128xf32>
    %cst_50 = arith.constant 1.000000e+00 : f32
    %136 = vector.broadcast %cst_50 : f32 to vector<1x128xf32>
    %137 = arith.addf %136, %135 : vector<1x128xf32>
    %138 = arith.divf %136, %137 : vector<1x128xf32>
    %cst_51 = arith.constant 0.000000e+00 : f32
    %139 = vector.broadcast %cst_51 : f32 to vector<1x128xf32>
    %140 = arith.cmpf one, %0, %139 : vector<1x128xf32>
    %cst_52 = arith.constant 1.000000e+00 : f32
    %141 = vector.broadcast %cst_52 : f32 to vector<1x128xf32>
    %142 = arith.subf %141, %138 : vector<1x128xf32>
    %143 = arith.mulf %128, %142 : vector<1x128xf32>
    %144 = arith.mulf %0, %138 : vector<1x128xf32>
    %145 = arith.addf %143, %144 : vector<1x128xf32>
    %146 = arith.select %140, %145, %128 : vector<1x128xi1>, vector<1x128xf32>
    %cst_53 = arith.constant dense<0xFF800000> : vector<1xf32>
    %147 = vector.multi_reduction <maximumf>, %146, %cst_53 [1] : vector<1x128xf32> to vector<1xf32>
    %148 = vector.shape_cast %147 : vector<1xf32> to vector<1x1xf32>
    %149 = vector.broadcast %148 : vector<1x1xf32> to vector<1x128xf32>
    %150 = arith.subf %146, %149 : vector<1x128xf32>
    %151 = math.exp %150 : vector<1x128xf32>
    %cst_54 = arith.constant dense<0.000000e+00> : vector<1xf32>
    %152 = vector.multi_reduction <add>, %151, %cst_54 [1] : vector<1x128xf32> to vector<1xf32>
    %153 = vector.shape_cast %152 : vector<1xf32> to vector<1x1xf32>
    %154 = tpu.reciprocal %153 {approx = true} : vector<1x1xf32> -> vector<1x1xf32>
    %155 = arith.mulf %153, %154 : vector<1x1xf32>
    %cst_55 = arith.constant 2.000000e+00 : f32
    %156 = vector.broadcast %cst_55 : f32 to vector<1x1xf32>
    %157 = arith.subf %156, %155 : vector<1x1xf32>
    %158 = arith.mulf %154, %157 : vector<1x1xf32>
    %159 = vector.broadcast %158 : vector<1x1xf32> to vector<1x128xf32>
    %160 = arith.mulf %151, %159 : vector<1x128xf32>
    %cst_56 = arith.constant 0.000000e+00 : f32
    %161 = vector.broadcast %cst_56 : f32 to vector<3x256xf32>
    %c0_57 = arith.constant 0 : index
    %c0_58 = arith.constant 0 : index
    %162 = vector.load %arg10[%c0_57, %c0_58] : memref<3x256xf32, #tpu.memory_space<vmem>>, vector<3x256xf32>
    tpu.vector_store %arg10[%c0_57, %c0_58], %161 {strides = array<i32>} : memref<3x256xf32, #tpu.memory_space<vmem>>, vector<3x256xf32>,
    %c0_59 = arith.constant 0 : index
    %c0_60 = arith.constant 0 : index
    %163 = vector.load %arg10[%c0_59, %c0_60] : memref<3x256xf32, #tpu.memory_space<vmem>>, vector<1x128xf32>
    tpu.vector_store %arg10[%c0_59, %c0_60], %160 {strides = array<i32>} : memref<3x256xf32, #tpu.memory_space<vmem>>, vector<1x128xf32>,
    %c1_61 = arith.constant 1 : index
    %c0_62 = arith.constant 0 : index
    %164 = vector.load %arg10[%c1_61, %c0_62] : memref<3x256xf32, #tpu.memory_space<vmem>>, vector<1x32xf32>
    tpu.vector_store %arg10[%c1_61, %c0_62], %123 {strides = array<i32>} : memref<3x256xf32, #tpu.memory_space<vmem>>, vector<1x32xf32>,
    %c2_63 = arith.constant 2 : index
    %c0_64 = arith.constant 0 : index
    %165 = vector.load %arg10[%c2_63, %c0_64] : memref<3x256xf32, #tpu.memory_space<vmem>>, vector<1x256xf32>
    tpu.vector_store %arg10[%c2_63, %c0_64], %80 {strides = array<i32>} : memref<3x256xf32, #tpu.memory_space<vmem>>, vector<1x256xf32>,
    return
  }
  func.func @transform_0(%arg0: i32, %arg1: memref<8xi32, #tpu.memory_space<smem>>) -> (i32, i32) {
    %c0_i32 = arith.constant 0 : i32
    %c0_i32_0 = arith.constant 0 : i32
    %c0_i32_1 = arith.constant 0 : i32
    return %c0_i32, %c0_i32_0 : i32, i32
  }
  func.func @transform_1(%arg0: i32, %arg1: memref<8xi32, #tpu.memory_space<smem>>) -> (i32, i32) {
    %c0_i32 = arith.constant 0 : i32
    %c0_i32_0 = arith.constant 0 : i32
    %c0_i32_1 = arith.constant 0 : i32
    return %c0_i32, %c0_i32_0 : i32, i32
  }
  func.func @transform_2(%arg0: i32, %arg1: memref<8xi32, #tpu.memory_space<smem>>) -> (i32, i32) {
    %c0_i32 = arith.constant 0 : i32
    %c0_i32_0 = arith.constant 0 : i32
    %c0_i32_1 = arith.constant 0 : i32
    return %c0_i32, %c0_i32_0 : i32, i32
  }
  func.func @transform_3(%arg0: i32, %arg1: memref<8xi32, #tpu.memory_space<smem>>) -> (i32, i32) {
    %c0_i32 = arith.constant 0 : i32
    %c0_i32_0 = arith.constant 0 : i32
    %c0_i32_1 = arith.constant 0 : i32
    return %c0_i32, %c0_i32_0 : i32, i32
  }
  func.func @transform_4(%arg0: i32, %arg1: memref<8xi32, #tpu.memory_space<smem>>) -> (i32, i32) {
    %c0_i32 = arith.constant 0 : i32
    %c0_i32_0 = arith.constant 0 : i32
    %c0_i32_1 = arith.constant 0 : i32
    return %c0_i32, %c0_i32_0 : i32, i32
  }
  func.func @transform_5(%arg0: i32, %arg1: memref<8xi32, #tpu.memory_space<smem>>) -> (i32, i32) {
    %c0_i32 = arith.constant 0 : i32
    %c0_i32_0 = arith.constant 0 : i32
    %c0_i32_1 = arith.constant 0 : i32
    return %c0_i32, %c0_i32_0 : i32, i32
  }
  func.func @transform_6(%arg0: i32, %arg1: memref<8xi32, #tpu.memory_space<smem>>) -> (i32, i32) {
    %c0_i32 = arith.constant 0 : i32
    %c0_i32_0 = arith.constant 0 : i32
    %c0_i32_1 = arith.constant 0 : i32
    return %c0_i32, %c0_i32_0 : i32, i32
  }
  func.func @transform_7(%arg0: i32, %arg1: memref<8xi32, #tpu.memory_space<smem>>) -> (i32, i32) {
    %c0_i32 = arith.constant 0 : i32
    %c0_i32_0 = arith.constant 0 : i32
    %c0_i32_1 = arith.constant 0 : i32
    return %c0_i32, %c0_i32_0 : i32, i32
  }
  func.func @transform_8(%arg0: i32, %arg1: memref<8xi32, #tpu.memory_space<smem>>) -> (i32, i32) {
    %c0_i32 = arith.constant 0 : i32
    %c0_i32_0 = arith.constant 0 : i32
    %c0_i32_1 = arith.constant 0 : i32
    return %c0_i32, %c0_i32_0 : i32, i32
  }
}

</mosaic_0001>

<bundles_post_ra>
// kernel: attn_decoder_step.1
= control target key start
LH: loop header
LB: loop body
LE: loop exit
PB: predicated region body
PF: predicated region fallthrough
CT: control target
= control target key end

     0   :  { %s1742_s0 = inlined_call_operand.vmem [shape: s32[8], index: 0, kind: input, shape index: {}]   ;;  %s1743_s1 = inlined_call_operand.vmem [shape: f32[1,128], index: 1, kind: input, shape index: {}]   ;;  %s1744_s2 = inlined_call_operand.vmem [shape: f32[1,32], index: 2, kind: input, shape index: {}]   ;;  %s1745_s3 = inlined_call_operand.vmem [shape: bf16[256,32], index: 3, kind: input, shape index: {}]   ;;  %s1746_s4 = inlined_call_operand.vmem [shape: bf16[64,256], index: 4, kind: input, shape index: {}]   ;;  %s1747_s5 = inlined_call_operand.hbm [shape: bf16[64,128], index: 5, kind: input, shape index: {}]   ;;  %s1748_s6 = inlined_call_operand.vmem [shape: bf16[192,128], index: 6, kind: input, shape index: {}]   ;;  %s1749_s7 = inlined_call_operand.vmem [shape: bf16[160,128], index: 7, kind: input, shape index: {}]   ;;  %s1750_s8 = inlined_call_operand.vmem [shape: f32[6,256], index: 8, kind: input, shape index: {}]   ;;  %s1751_s9 = inlined_call_operand.vmem [shape: f32[3,256], index: 9, kind: output, shape index: {}]  }
   0x1   :  { %s14_s11 = sshll.u32 %s1742_s0, 4  ;;  %s15_s11 = int_to_ptr.vmem [resolvable:$true] %s14_s11 }
   0x2   :  { %s1353_s12 = scalar_lea.vmem %s15_s11, 16  ;;  %p1358_p1 = scmp.lt.s32.totalorder %s15_s11, %s15_s11 }
   0x3   :  { %p1354_p0 = scmp.ne.s32.totalorder %s15_s11, %s1353_s12  ;;  %p1359_p2 = scmp.lt.s32.totalorder %s1353_s12, %s1353_s12 }
   0x5   :  { %p1360_p3 = por %p1359_p2, %p1358_p1 }
   0x7   :  { %p1361_p4 = pnand %p1360_p3, %p1354_p0 }
   0x9   :  { %1364 = shalt.err (!%p1361_p4)  }
   0xa   :  { %s1391_s13 = smov [#allocation3]  }
   0xb   :  { %17 = dma.vmem_to_smem %s15_s11, 16, %s1391_s13, [#allocation2] }
   0xc   :  { %1387 = dma.done.wait [#allocation2], 16 }
   0xd   :  { %1388 = vsyncadd [#allocation2], 4294967280 }
   0xe   :  { %19 = sfence }
   0xf   :  { %20 = vsyncpa [#allocation5], 0  ;;  %s1392_s14 = smov [#allocation4]   ;;  %s1365_s0 = scalar_lea.hbm %s1747_s5, 512 }
  0x10   :  { %s34_s15 = sshll.u32 %s1392_s14, 4  ;;  %p1366_p5 = scmp.ne.s32.totalorder %s1747_s5, %s1365_s0  ;;  %s35_s15 = int_to_ptr.vmem [resolvable:$true] %s34_s15 }
  0x11   :  { %p1369_p6 = scmp.lt.u32.totalorder %s1365_s0, %s1747_s5 }
  0x13   :  { %p1371_p7 = pnand %p1369_p6, %p1366_p5 }
  0x15   :  { %1374 = shalt.err (!%p1371_p7)
}
  0x16   :  { %s1375_s22 = scalar_lea.vmem %s35_s15, 512  ;;  %p1380_p9 = scmp.lt.s32.totalorder %s35_s15, %s35_s15 }
  0x17   :  { %p1376_p8 = scmp.ne.s32.totalorder %s35_s15, %s1375_s22  ;;  %p1381_p10 = scmp.lt.s32.totalorder %s1375_s22, %s1375_s22 }
  0x19   :  { %p1382_p11 = por %p1381_p10, %p1380_p9 }
  0x1b   :  { %p1383_p12 = pnand %p1382_p11, %p1376_p8 }
  0x1d   :  { %1386 = shalt.err (!%p1383_p12)
}
  0x1e   :  { %s1393_s23 = smov 64   ;;  %s1394_s24 = smov 4  }
  0x1f   :  { %40 = dma.hbm_to_vmem [thread:$0]  %s1747_s5, 512, %s35_s15, [#allocation5], %s1393_s23, %s1393_s23, %s1394_s24  }
  0x20   :  { %1389 = dma.done.wait [#allocation5], 512  }
  0x21   :  { %1390 = vsyncadd [#allocation5], 4294966784  ;;  %v54_v0 = vlaneseq  ;;  %v1395_v1 = vmov 0.0   ;;  %vm1396_vm0 = vmmov 0   ;;  %s56_s29 = sld [smem:[#allocation3]]  ;;  %s1060_s30 = sld [smem:[#allocation3 + $0x1]] }
  0x22   :  { %1189 = vmatprep.subr.bf16.mxu0 %v1395_v1  ;;  %1022 = vst [vmem:[%s1751_s9] sm:$0x77] %v1395_v1  ;;  %1205 = vmatprep.mubr.msk.bf16.mxu0 %vm1396_vm0, %v1395_v1  ;;  %s1062_s10 = sld [smem:[#allocation3 + $0x2]]  ;;  %s1064_s11 = sld [smem:[#allocation3 + $0x3]]  ;;  %v1397_v2 = vmov 0   ;;  %v1279_v4 = vld [vmem:[%s1748_s6] sm:$0xff]   ;;  %v1280_v7 = vld [vmem:[%s1748_s6 + $0x8] sm:$0xff]  }
  0x23   :  { %339 = vmatprep.mubr.bf16.mxu1 %v1397_v2  ;;  %s1066_s5 = sld [smem:[#allocation3 + $0x4]]  ;;  %v55_v3 = vand.u32 127, %v54_v0  ;;  %s1068_s12 = sld [smem:[#allocation3 + $0x5]]  ;;  %1190 = vmatpush3.bf16.msra.mxu0 %v1279_v4  ;;  %v1281_v17 = vld [vmem:[%s1748_s6 + $0x10] sm:$0xff]   ;;  %v1282_v23 = vld [vmem:[%s1748_s6 + $0x18] sm:$0xff]   ;;  %v1283_v29 = vld [vmem:[%s1748_s6 + $0x20] sm:$0xff]  }
  0x24   :  { %s1477_s13 = sld [smem:[#allocation3 + $0x6]]  ;;  %s1479_s14 = sld [smem:[#allocation3 + $0x7]]  ;;  %1191 = vmatprep.subr.bf16.mxu0 %v1395_v1  ;;  %v1290_v26 = vld [vmem:[%s1746_s4 + $0x4] ss:$8 sps:$4 sm:$0xff]   ;;  %v1295_v28 = vld [vmem:[%s1746_s4] ss:$8 sps:$4 sm:$0xff]  }
  0x25   :  { %307 = vmatprep.subr.bf16.mxu1 %v1290_v26  ;;  %v1296_v32 = vld [vmem:[%s1746_s4 + $0x14] ss:$8 sps:$4 sm:$0xff]   ;;  %v1284_v35 = vld [vmem:[%s1748_s6 + $0x28] sm:$0xff]   ;;  %v1292_v43 = vld [vmem:[%s1746_s4 + $0x30] ss:$8 sps:$4 sm:$0xff]   ;;  %vm239_vm9 = vcmask 261120  }
  0x26   :  { %308 = vmatpush1.bf16.msra.mxu1 %v1295_v28  ;;  %v1285_v37 = vld [vmem:[%s1748_s6 + $0x30] sm:$0xff]   ;;  %v1286_v38 = vld [vmem:[%s1748_s6 + $0x38] sm:$0xff]   ;;  %v1289_v39 = vld [vmem:[%s1746_s4 + $0x24] ss:$8 sps:$4 sm:$0xff]   ;;  %v1566_v56 = vshrl.u32 %v54_v0, 7  ;;  %vm362_vm10 = vcmask 1040384  }
  0x27   :  { %v57_v5 = vstv %s56_s29  ;;  %v63_v6 = vstv %s1060_s30  ;;  %1192 = vmatpush3.bf16.msra.mxu0 %v1280_v7  ;;  %309 = vmatprep.subr.bf16.mxu1 %v1296_v32  ;;  %v1287_v40 = vld [vmem:[%s1746_s4 + $0x20] ss:$8 sps:$4 sm:$0xff]   ;;  %v1294_v42 = vld [vmem:[%s1746_s4 + $0x34] ss:$8 sps:$4 sm:$0xff]   ;;  %vm1050_vm11 = vcmp.lt.s32.totalorder %v54_v0, 256  ;;  %vm1028_vm13 = vcmask 253952  }
  0x28   :  { %vm58_vm1 = vcmp.eq.s32.totalorder %v55_v3, %v57_v5  ;;  %vm64_vm2 = vcmp.eq.s32.totalorder %v55_v3, %v63_v6  ;;  %v69_v9 = vstv %s1062_s10  ;;  %v75_v11 = vstv %s1064_s11  ;;  %1193 = vmatprep.subr.bf16.mxu0 %v1395_v1  ;;  %v1548_v44 = vld [vmem:[%s1744_s2] sm:$0x1]  ;;  %v1298_v46 = vld [vmem:[%s1746_s4 + $0x10] ss:$8 sps:$4 sm:$0xff]   ;;  %s1399_s2 = smov 32  }
  0x29   :  { %v1059_v8 = vsel %vm58_vm1, 1.0, %v1395_v1  ;;  %v1061_v10 = vsel %vm64_vm2, 1.0, %v1395_v1  ;;  %vm70_vm3 = vcmp.eq.s32.totalorder %v55_v3, %v69_v9  ;;  %vm76_vm4 = vcmp.eq.s32.totalorder %v55_v3, %v75_v11  ;;  %v348_v58 = vld [vmem:[%s1750_s8] ss:$8 sm:$0x3]  ;;  %v1306_v28 = vld [vmem:[%s1745_s3 + $0x18] sm:$0xff]  }
  0x2a   :  { %v67_v12 = vadd.f32 %v1061_v10, %v1059_v8  ;;  %v1063_v13 = vsel %vm70_vm3, 1.0, %v1395_v1  ;;  %v81_v14 = vstv %s1066_s5  ;;  %v1065_v15 = vsel %vm76_vm4, 1.0, %v1395_v1  ;;  %310 = vmatpush1.bf16.msra.mxu1 %v1298_v46  ;;  %v1299_v11 = vld [vmem:[%s1745_s3 + $0x40] sm:$0xff]   ;;  %v1310_v32 = vld [vmem:[%s1745_s3 + $0x28] sm:$0xff]  }
  0x2b   :  { %vm82_vm5 = vcmp.eq.s32.totalorder %v55_v3, %v81_v14  ;;  %v87_v16 = vstv %s1068_s12  ;;  %v93_v19 = vstv %s1477_s13  ;;  %v99_v21 = vstv %s1479_s14  ;;  %1194 = vmatpush3.bf16.msra.mxu0 %v1281_v17  ;;  %1143 = vmatprep.subr.bf16.mxu1 %v1299_v11  ;;  %v1302_v14 = vld [vmem:[%s1745_s3 + $0x8] sm:$0xff]   ;;  %s1400_s13 = smov 96  }
  0x2c   :  { %v73_v18 = vadd.f32 %v1063_v13, %v67_v12  ;;  %vm88_vm6 = vcmp.eq.s32.totalorder %v55_v3, %v87_v16  ;;  %v1067_v20 = vsel %vm82_vm5, 1.0, %v1395_v1  ;;  %vm94_vm7 = vcmp.eq.s32.totalorder %v55_v3, %v93_v19  ;;  %1195 = vmatprep.subr.bf16.mxu0 %v1395_v1  ;;  %v1300_v12 = vld [vmem:[%s1745_s3] sm:$0xff]   ;;  %v1301_v13 = vld [vmem:[%s1745_s3 + $0x48] sm:$0xff]   ;;  %v1304_v16 = vld [vmem:[%s1745_s3 + $0x10] sm:$0xff]  }
  0x2d   :  { %v1069_v24 = vsel %vm88_vm6, 1.0, %v1395_v1  ;;  %vm100_vm8 = vcmp.eq.s32.totalorder %v55_v3, %v99_v21  ;;  %v1071_v27 = vsel %vm94_vm7, 1.0, %v1395_v1  ;;  %v1552_v45 = vpack.c.bf16 %v1548_v44, %v1548_v44 }
  0x2e   :  { %v79_v22 = vadd.f32 %v1065_v15, %v73_v18  ;;  %v1073_v31 = vsel %vm100_vm8, 1.0, %v1395_v1  ;;  %v352_v57 = vsub.s32 0, %v1566_v56  ;;  %v356_v59 = vsub.s32 1, %v1566_v56  ;;  %v1303_v15 = vld [vmem:[%s1745_s3 + $0x50] sm:$0xff]  }
  0x2f   :  { %1196 = vmatpush3.bf16.msra.mxu0 %v1282_v23 }
  0x30   :  { %v85_v25 = vadd.f32 %v1067_v20, %v79_v22  ;;  %1197 = vmatprep.subr.bf16.mxu0 %v1395_v1  ;;  %v353_v60 = vrot.slane %v348_v58, %v352_v57  ;;  %v357_v62 = vrot.slane %v348_v58, %v356_v59  ;;  %v1316_v59 = vld [vmem:[%s1748_s6 + $0x58] sm:$0xff]  }
  0x32   :  { %v91_v30 = vadd.f32 %v1069_v24, %v85_v25 }
  0x33   :  { %1198 = vmatpush3.bf16.msra.mxu0 %v1283_v29  ;;  %v1307_v29 = vld [vmem:[%s1745_s3 + $0x60] sm:$0xff]  }
  0x34   :  { %v97_v33 = vadd.f32 %v1071_v27, %v91_v30  ;;  %1199 = vmatprep.subr.bf16.mxu0 %v1395_v1  ;;  %v1305_v27 = vld [vmem:[%s1745_s3 + $0x58] sm:$0xff]   ;;  %v1308_v30 = vld [vmem:[%s1745_s3 + $0x20] sm:$0xff]  }
  0x36   :  { %v103_v34 = vadd.f32 %v1073_v31, %v97_v33  ;;  %v1309_v31 = vld [vmem:[%s1745_s3 + $0x68] sm:$0xff]   ;;  %v1311_v33 = vld [vmem:[%s1745_s3 + $0x70] sm:$0xff]  }
  0x37   :  { %1200 = vmatpush3.bf16.msra.mxu0 %v1284_v35  ;;  %v1313_v35 = vld [vmem:[%s1745_s3 + $0x78] sm:$0xff]  }
  0x38   :  { %v104_v36 = vmul.f32 0.125, %v103_v34  ;;  %1201 = vmatprep.subr.bf16.mxu0 %v1395_v1  ;;  %v1312_v34 = vld [vmem:[%s1745_s3 + $0x30] sm:$0xff]  }
  0x3a   :  { %v105_v41 = vpack.c.bf16 %v104_v36, %v104_v36  ;;  %v1314_v36 = vld [vmem:[%s1745_s3 + $0x38] sm:$0xff]  }
  0x3b   :  { %1202 = vmatpush3.bf16.msra.mxu0 %v1285_v37  ;;  %v1315_v37 = vld [vmem:[%s1748_s6 + $0x50] sm:$0xff]  }
  0x3c   :  { %1203 = vmatprep.subr.bf16.mxu0 %v1395_v1 }
  0x3f   :  { %1204 = vmatpush3.bf16.msra.mxu0 %v1286_v38 }
  0x40   :  { %243 = vmatprep.subr.bf16.mxu0 %v1289_v39  ;;  %v1398_v39 = vmov 1966171168  }
  0x42   :  { %1206 = vmatmul.mubr.bf16.vlgmr.msra.gmra.mrb[0].mxu0 %v105_v41 }
  0x43   :  { %244 = vmatpush1.bf16.msra.mxu0 %v1287_v40  ;;  %275 = vmatprep.mubr.bf16.mxu0 %v1397_v2  ;;  %v1034_v40 = vunpack.c.l.s4 %v1398_v39  ;;  %v820_v39 = vrot.slane %v1548_v44, %v352_v57  ;;  %v1331_v44 = vld [vmem:[%s1749_s7] sm:$0xff]  }
  0x44   :  { %245 = vmatprep.subr.bf16.mxu0 %v1294_v42 }
  0x45   :  { %v1035_v46 = vunpack.c.0.s8 %v1034_v40 }
  0x47   :  { %246 = vmatpush1.bf16.msra.mxu0 %v1292_v43 }
  0x48   :  { %1209 = vmatprep.subr.bf16.mxu0 %v1395_v1 }
  0x4a   :  { %1086 = vmatmul.mubr.msk.bf16.vlgmr.msra.gmra.mrb[4].mxu0 %vm239_vm9, %v1552_v45 }
  0x4b   :  { %1213 = vmatprep.mubr.msk.bf16.mxu0 %vm1396_vm0, %v1395_v1  ;;  %1210 = vmatpush3.bf16.msra.mxu0 %v1315_v37 }
  0x4c   :  { %1211 = vmatprep.subr.bf16.mxu0 %v1395_v1 }
  0x4f   :  { %1212 = vmatpush3.bf16.msra.mxu0 %v1316_v59 }
  0x50   :  { %1217 = vmatprep.subr.bf16.mxu0 %v1395_v1 }
 0x115   :  { %v204_v47 = vpop.f32.mrb[0].mxu0 }
 0x116   :  { %v1561_v48 = vpack.c.bf16 %v204_v47, %v204_v47  ;;  %v1207_v49 = vpop.f32.mrb[1].mxu0 }
 0x117   :  { %v207_v50 = vpop.f32.mrb[2].mxu0 }
 0x118   :  { %v1208_v51 = vpop.f32.mrb[3].mxu0  ;;  %1091 = vmatmul.mubr.msk.bf16.vlgmr.msra.gmra.mrb[0].mxu1 %vm239_vm9, %v1561_v48 }
 0x119   :  { %1144 = vmatpush3.bf16.msra.mxu1 %v1300_v12  ;;  %v1038_v51 = vsub.s32 %v1035_v46, %v1566_v56  ;;  %v1332_v56 = vld [vmem:[%s1749_s7 + $0x8] sm:$0xff]   ;;  %v1325_v46 = vld [vmem:[%s1749_s7 + $0x20] sm:$0xff]  }
 0x11a   :  { %1145 = vmatprep.subr.bf16.mxu1 %v1301_v13 }
 0x11d   :  { %v277_v52 = vpop.f32.mrb[4].mxu0  ;;  %1146 = vmatpush3.bf16.msra.mxu1 %v1302_v14 }
 0x11e   :  { %v279_v53 = vpop.f32.mrb[5].mxu0  ;;  %1147 = vmatprep.subr.bf16.mxu1 %v1303_v15 }
 0x11f   :  { %v281_v54 = vpop.f32.mrb[6].mxu0 }
 0x120   :  { %v282_v55 = vpop.f32.mrb[7].mxu0 }
 0x121   :  { %1148 = vmatpush3.bf16.msra.mxu1 %v1304_v16 }
 0x122   :  { %1149 = vmatprep.subr.bf16.mxu1 %v1305_v27 }
 0x125   :  { %1150 = vmatpush3.bf16.msra.mxu1 %v1306_v28 }
 0x126   :  { %1151 = vmatprep.subr.bf16.mxu1 %v1307_v29 }
 0x129   :  { %1152 = vmatpush3.bf16.msra.mxu1 %v1308_v30 }
 0x12a   :  { %1153 = vmatprep.subr.bf16.mxu1 %v1309_v31 }
 0x12d   :  { %1154 = vmatpush3.bf16.msra.mxu1 %v1310_v32 }
 0x12e   :  { %1155 = vmatprep.subr.bf16.mxu1 %v1311_v33 }
 0x131   :  { %1156 = vmatpush3.bf16.msra.mxu1 %v1312_v34 }
 0x132   :  { %1157 = vmatprep.subr.bf16.mxu1 %v1313_v35 }
 0x135   :  { %1158 = vmatpush3.bf16.msra.mxu1 %v1314_v36 }
 0x136   :  { %1233 = vmatprep.subr.bf16.mxu1 %v1395_v1 }
 0x1eb   :  { %v341_v61 = vpop.f32.mrb[0].mxu1 }
 0x1ec   :  { %v342_v63 = vadd.f32 %v341_v61, %v277_v52  ;;  %v343_v2 = vpop.f32.mrb[1].mxu1  ;;  %v1320_v61 = vld [vmem:[#allocation4 + $0x18] sm:$0xff]  }
 0x1ed   :  { %v344_v3 = vadd.f32 %v343_v2, %v279_v53  ;;  %v345_v4 = vpop.f32.mrb[2].mxu1 }
 0x1ee   :  { %v360_v5 = vadd.f32 %v353_v60, %v342_v63  ;;  %v346_v6 = vpop.f32.mrb[3].mxu1  ;;  %v1319_v60 = vld [vmem:[#allocation4 + $0x10] sm:$0xff]   ;;  %v1317_v4 = vld [vmem:[%s1748_s6 + $0x40] sm:$0xff]  }
 0x1ef   :  { %v361_v7 = vadd.f32 %v357_v62, %v344_v3  ;;  %v1321_v6 = vld [vmem:[#allocation4] sm:$0xff]  }
 0x1f0   :  { %v363_v8 = vsel %vm362_vm10, %v360_v5, -inf }
 0x1f1   :  { %v364_v9 = vsel %vm362_vm10, %v361_v7, -inf }
 0x1f2   :  { %v365_v10 = vmax.f32 %v363_v8, %v364_v9  ;;  %v739_v8 = vld [vmem:[%s1750_s8 + $0x3] ss:$0 sm:$0xff] }
 0x1f4   :  { %366 = vmax.xlane.f32.xlu0 %v365_v10 }
 0x281   :  { %v367_v17 = vpop.xlane.xlu0 %366 }
 0x282   :  { %v368_v18 = vsub.f32 %v360_v5, %v367_v17  ;;  %v369_v19 = vsub.f32 %v361_v7, %v367_v17  ;;  %v1322_v7 = vld [vmem:[#allocation4 + $0x8] sm:$0xff]  }
 0x284   :  { %v370_v20 = vmul.f32 1.442695, %v368_v18  ;;  %v372_v21 = vmul.f32 1.442695, %v369_v19  ;;  %v671_v18 = vld [vmem:[%s1750_s8 + $0x1] ss:$0 sm:$0xff] }
 0x286   :  { %1333 = vpow2.f32 %v370_v20 }
 0x287   :  { %1335 = vpow2.f32 %v372_v21 }
 0x290   :  { %v1334_v22 = vpop.eup %1333 }
 0x291   :  { %v1336_v23 = vpop.eup %1335  ;;  %v374_v24 = vsel %vm362_vm10, %v1334_v22, 0.0 }
 0x292   :  { %v375_v25 = vsel %vm362_vm10, %v1336_v23, 0.0 }
 0x293   :  { %v376_v26 = vadd.f32 %v375_v25, %v374_v24 }
 0x295   :  { %377 = vadd.xlane.f32.xlu0 %v376_v26  ;;  %v679_v26 = vld [vmem:[%s1750_s8 + $0x2] ss:$0 sm:$0xff] }
 0x322   :  { %v378_v38 = vpop.xlane.xlu0 %377 }
 0x323   :  { %1337 = vrcp.f32 %v378_v38 }
 0x32d   :  { %v1338_v41 = vpop.eup %1337 }
 0x32e   :  { %v380_v42 = vmul.f32 %v1338_v41, %v378_v38 }
 0x330   :  { %v381_v43 = vsub.f32 2.0, %v380_v42  ;;  %v1323_v42 = vld [vmem:[%s1749_s7 + $0x10] sm:$0xff]  }
 0x332   :  { %v382_v47 = vmul.f32 %v1338_v41, %v381_v43  ;;  %v1324_v43 = vld [vmem:[%s1749_s7 + $0x18] sm:$0xff]  }
 0x334   :  { %v383_v49 = vmul.f32 %v1334_v22, %v382_v47  ;;  %v384_v50 = vmul.f32 %v1336_v23, %v382_v47  ;;  %v1326_v47 = vld [vmem:[%s1749_s7 + $0x28] sm:$0xff]  }
 0x336   :  { %v386_v52 = vpack.c.bf16 %v384_v50, %v384_v50  ;;  %v1032_v53 = vcombine.low %v383_v49, %v384_v50  ;;  %v385_v54 = vpack.c.bf16 %v383_v49, %v383_v49  ;;  %v1327_v49 = vld [vmem:[%s1749_s7 + $0x30] sm:$0xff]   ;;  %v1328_v50 = vld [vmem:[%s1749_s7 + $0x38] sm:$0xff]  }
 0x338   :  { %547 = vmatprep.mubr.bf16.mxu1 %v386_v52  ;;  %v1039_v55 = vrot.slane %v1032_v53, %v1038_v51  ;;  %v1330_v52 = vld [vmem:[%s1749_s7 + $0x48] sm:$0xff]   ;;  %v51_v53 = vld [vmem:[%s1743_s1] sm:$0x1] }
 0x339   :  { %548 = vmatmul.mubr.bf16.vlgmr.msra.gmra.mrb[4].mxu1 %v385_v54  ;;  %v890_v54 = vpack.c.bf16 %v51_v53, %v51_v53  ;;  %vm1002_vm12 = vcmp.ne.f32.partialorder %v51_v53, 0.0 }
 0x33a   :  { %v1046_v58 = vrot.slane %v1039_v55, %v1038_v51  ;;  %1237 = vmatprep.mubr.msk.bf16.mxu1 %vm1396_vm0, %v1395_v1  ;;  %1234 = vmatpush3.bf16.msra.mxu1 %v1319_v60  ;;  %v1329_v51 = vld [vmem:[%s1749_s7 + $0x40] sm:$0xff]  }
 0x33b   :  { %1235 = vmatprep.subr.bf16.mxu1 %v1395_v1 }
 0x33c   :  { %1133 = vst.msk [vmem:[%s1751_s9 + $0x2] ss:$4 sm:$0x3] %vm1050_vm11, %v1046_v58 }
 0x33e   :  { %1236 = vmatpush3.bf16.msra.mxu1 %v1320_v61 }
 0x33f   :  { %1249 = vmatprep.subr.bf16.mxu1 %v1395_v1 }
 0x341   :  { %1238 = vmatmul.mubr.msk.bf16.vlgmr.msra.gmra.mrb[8].mxu1 %vm239_vm9, %v1552_v45  ;;  %v1318_v45 = vld [vmem:[%s1748_s6 + $0x48] sm:$0xff]  }
 0x342   :  { %1265 = vmatprep.mubr.msk.bf16.mxu1 %vm1396_vm0, %v1395_v1  ;;  %1250 = vmatpush3.bf16.msra.mxu1 %v1323_v42 }
 0x343   :  { %1251 = vmatprep.subr.bf16.mxu1 %v1395_v1 }
 0x346   :  { %1252 = vmatpush3.bf16.msra.mxu1 %v1324_v43 }
 0x347   :  { %1253 = vmatprep.subr.bf16.mxu1 %v1395_v1 }
 0x34a   :  { %1254 = vmatpush3.bf16.msra.mxu1 %v1325_v46 }
 0x34b   :  { %1255 = vmatprep.subr.bf16.mxu1 %v1395_v1 }
 0x34e   :  { %1256 = vmatpush3.bf16.msra.mxu1 %v1326_v47 }
 0x34f   :  { %1257 = vmatprep.subr.bf16.mxu1 %v1395_v1 }
 0x352   :  { %1258 = vmatpush3.bf16.msra.mxu1 %v1327_v49 }
 0x353   :  { %1259 = vmatprep.subr.bf16.mxu1 %v1395_v1 }
 0x356   :  { %1260 = vmatpush3.bf16.msra.mxu1 %v1328_v50 }
 0x357   :  { %1261 = vmatprep.subr.bf16.mxu1 %v1395_v1 }
 0x35a   :  { %1262 = vmatpush3.bf16.msra.mxu1 %v1329_v51 }
 0x35b   :  { %1263 = vmatprep.subr.bf16.mxu1 %v1395_v1 }
 0x35e   :  { %1264 = vmatpush3.bf16.msra.mxu1 %v1330_v52 }
 0x361   :  { %1266 = vmatmul.mubr.bf16.vlgmr.msra.gmra.mrb[12].mxu1 %v890_v54 }
 0x40c   :  { %v1159_v0 = vpop.f32.mrb[4].mxu1 }
 0x40d   :  { %v1160_v62 = vpop.f32.mrb[5].mxu1 }
 0x40e   :  { %v1161_v63 = vadd.f32 %v1160_v62, %v1159_v0  ;;  %v1162_v2 = vpop.f32.mrb[6].mxu1 }
 0x40f   :  { %v1163_v3 = vpop.f32.mrb[7].mxu1 }
 0x410   :  { %v559_v5 = vpack.c.bf16 %v1161_v63, %v1161_v63 }
 0x412   :  { %1214 = vmatmul.mubr.msk.bf16.vlgmr.msra.gmra.mrb[8].mxu0 %vm239_vm9, %v559_v5 }
 0x413   :  { %1218 = vmatpush3.bf16.msra.mxu0 %v1317_v4  ;;  %1221 = vmatprep.mubr.msk.bf16.mxu0 %vm1396_vm0, %v1395_v1 }
 0x414   :  { %1219 = vmatprep.subr.bf16.mxu0 %v1395_v1  ;;  %v786_v9 = vpop.f32.mrb[8].mxu1 }
 0x415   :  { %v787_v10 = vadd.f32 %v786_v9, %v739_v8  ;;  %v1239_v11 = vpop.f32.mrb[9].mxu1 }
 0x416   :  { %v789_v12 = vpop.f32.mrb[10].mxu1 }
 0x417   :  { %1220 = vmatpush3.bf16.msra.mxu0 %v1318_v45  ;;  %800 = vrot.lane.b32.xlu1 %v787_v10, %s1393_s23 }
 0x418   :  { %1225 = vmatprep.subr.bf16.mxu0 %v1395_v1 }
 0x41a   :  { %1222 = vmatmul.mubr.msk.bf16.vlgmr.msra.gmra.mrb[12].mxu0 %vm239_vm9, %v1561_v48  ;;  %v1240_v48 = vpop.f32.mrb[11].mxu1 }
 0x41b   :  { %1229 = vmatprep.mubr.msk.bf16.mxu0 %vm1396_vm0, %v1395_v1  ;;  %1226 = vmatpush3.bf16.msra.mxu0 %v1321_v6 }
 0x41c   :  { %1227 = vmatprep.subr.bf16.mxu0 %v1395_v1 }
 0x41f   :  { %1228 = vmatpush3.bf16.msra.mxu0 %v1322_v7 }
 0x420   :  { %1241 = vmatprep.subr.bf16.mxu0 %v1395_v1 }
 0x434   :  { %v990_v2 = vpop.f32.mrb[12].mxu1 }
 0x435   :  { %v1267_v3 = vpop.f32.mrb[13].mxu1 }
 0x436   :  { %v993_v4 = vpop.f32.mrb[14].mxu1 }
 0x437   :  { %v1268_v5 = vpop.f32.mrb[15].mxu1 }
 0x489   :  { %v801_v36 = vpop.permute.xlu1 %800 }
 0x4e5   :  { %v613_v13 = vpop.f32.mrb[8].mxu0 }
 0x4e6   :  { %v1215_v14 = vpop.f32.mrb[9].mxu0 }
 0x4e7   :  { %v616_v15 = vpop.f32.mrb[10].mxu0 }
 0x4e8   :  { %v1216_v16 = vpop.f32.mrb[11].mxu0 }
 0x4ed   :  { %v665_v17 = vpop.f32.mrb[12].mxu0 }
 0x4ee   :  { %v666_v19 = vadd.f32 %v665_v17, %v613_v13  ;;  %v1223_v20 = vpop.f32.mrb[13].mxu0 }
 0x4ef   :  { %v668_v21 = vpop.f32.mrb[14].mxu0 }
 0x4f0   :  { %v672_v22 = vadd.f32 %v671_v18, %v666_v19  ;;  %v1224_v23 = vpop.f32.mrb[15].mxu0 }
 0x4f2   :  { %v673_v24 = vmax.f32 %v672_v22, 0.0 }
 0x4f4   :  { %v674_v25 = vpack.c.bf16 %v673_v24, %v673_v24 }
 0x4f6   :  { %1230 = vmatmul.mubr.msk.bf16.vlgmr.msra.gmra.mrb[16].mxu0 %vm239_vm9, %v674_v25 }
 0x4f7   :  { %1245 = vmatprep.mubr.msk.bf16.mxu0 %vm1396_vm0, %v1395_v1  ;;  %1242 = vmatpush3.bf16.msra.mxu0 %v1331_v44 }
 0x4f8   :  { %1243 = vmatprep.subr.bf16.mxu0 %v1395_v1  ;;  %v907_v1 = vld [vmem:[%s1750_s8 + $0x5] ss:$0 sm:$0xff] }
 0x4f9   :  { %v991_v45 = vadd.f32 %v990_v2, %v907_v1 }
 0x4fb   :  { %1244 = vmatpush3.bf16.msra.mxu0 %v1332_v56  ;;  %v1132_v6 = vmul.f32 -1.442695, %v991_v45 }
 0x5c9   :  { %v729_v27 = vpop.f32.mrb[16].mxu0 }
 0x5ca   :  { %v730_v28 = vadd.f32 %v729_v27, %v679_v26  ;;  %v1231_v29 = vpop.f32.mrb[17].mxu0 }
 0x5cb   :  { %v732_v30 = vpop.f32.mrb[18].mxu0 }
 0x5cc   :  { %v792_v31 = vadd.f32 %v787_v10, %v730_v28  ;;  %v1232_v32 = vpop.f32.mrb[19].mxu0  ;;  %v831_v10 = vld [vmem:[%s1750_s8 + $0x4] ss:$0 sm:$0xff] }
 0x5ce   :  { %v1120_v33 = vmul.f32 -1.442695, %v792_v31 }
 0x5d0   :  { %1339 = vpow2.f32 %v1120_v33 }
 0x5da   :  { %v1340_v34 = vpop.eup %1339 }
 0x5db   :  { %v796_v35 = vadd.f32 1.0, %v1340_v34 }
 0x5dd   :  { %1341 = vrcp.f32 %v796_v35 }
 0x5e7   :  { %v1342_v37 = vpop.eup %1341 }
 0x5e8   :  { %v803_v38 = vmul.f32 %v1342_v37, %v801_v36  ;;  %v810_v58 = vsub.f32 1.0, %v1342_v37 }
 0x5ea   :  { %805 = vrot.lane.b32.xlu1 %v803_v38, %s1393_s23 }
 0x5ee   :  { %821 = vrot.lane.b32.xlu1 %v820_v39, %s1399_s2 }
 0x65c   :  { %v806_v40 = vpop.permute.xlu1 %805 }
 0x65d   :  { %v808_v41 = vadd.f32 %v806_v40, %v730_v28 }
 0x65f   :  { %1343 = vtanh.f32 %v808_v41 }
 0x660   :  { %v822_v55 = vpop.permute.xlu1 %821  ;;  %1345 = vpow2.f32 %v1132_v6 }
 0x661   :  { %v824_v60 = vmul.f32 %v1342_v37, %v822_v55 }
 0x669   :  { %v1344_v57 = vpop.eup %1343 }
 0x66a   :  { %812 = vrot.lane.b32.xlu0 %v1344_v57, %s1400_s13  ;;  %v1346_v7 = vpop.eup %1345 }
 0x66b   :  { %v999_v8 = vadd.f32 1.0, %v1346_v7 }
 0x66d   :  { %1347 = vrcp.f32 %v999_v8 }
 0x677   :  { %v1348_v9 = vpop.eup %1347 }
 0x678   :  { %v1003_v11 = vsub.f32 1.0, %v1348_v9  ;;  %v1005_v16 = vmul.f32 %v1348_v9, %v51_v53 }
 0x6dc   :  { %v813_v59 = vpop.permute.xlu0 %812 }
 0x6dd   :  { %v815_v61 = vmul.f32 %v813_v59, %v810_v58 }
 0x6df   :  { %v825_v0 = vadd.f32 %v824_v60, %v815_v61 }
 0x6e1   :  { %v826_v62 = vpack.c.bf16 %v825_v0, %v825_v0 }
 0x6e3   :  { %833 = vrot.lane.b32.xlu1 %v826_v62, %s1400_s13 }
 0x755   :  { %v834_v63 = vpop.permute.xlu1 %833 }
 0x756   :  { %1246 = vmatmul.mubr.msk.bf16.vlgmr.msra.gmra.mrb[20].mxu0 %vm239_vm9, %v834_v63 }
 0x829   :  { %v884_v12 = vpop.f32.mrb[20].mxu0 }
 0x82a   :  { %v885_v48 = vadd.f32 %v884_v12, %v831_v10  ;;  %v1247_v13 = vpop.f32.mrb[21].mxu0 }
 0x82b   :  { %v887_v14 = vpop.f32.mrb[22].mxu0 }
 0x82c   :  { %v1004_v15 = vmul.f32 %v1003_v11, %v885_v48  ;;  %v1248_v17 = vpop.f32.mrb[23].mxu0 }
 0x82e   :  { %v1006_v18 = vadd.f32 %v1005_v16, %v1004_v15 }
 0x830   :  { %v1007_v19 = vsel %vm1002_vm12, %v1006_v18, %v885_v48 }
 0x831   :  { %v1008_v20 = vsel %vm362_vm10, %v1007_v19, -inf }
 0x832   :  { %1009 = vmax.xlane.f32.xlu1 %v1008_v20 }
 0x843   :  { %1025 = vrot.lane.b32.xlu1 %v825_v0, %s1400_s13 }
 0x8bf   :  { %v1010_v21 = vpop.xlane.xlu1 %1009 }
 0x8c0   :  { %v1011_v22 = vsub.f32 %v1007_v19, %v1010_v21 }
 0x8c2   :  { %v1012_v23 = vmul.f32 1.442695, %v1011_v22 }
 0x8c3   :  { %v1026_v24 = vpop.permute.xlu1 %1025 }
 0x8c4   :  { %1349 = vpow2.f32 %v1012_v23  ;;  %1029 = vst.msk [vmem:[%s1751_s9 + $0x1] sm:$0x1] %vm1028_vm13, %v1026_v24 }
 0x8ce   :  { %v1350_v25 = vpop.eup %1349 }
 0x8cf   :  { %v1014_v26 = vsel %vm362_vm10, %v1350_v25, 0.0 }
 0x8d0   :  { %1015 = vadd.xlane.f32.xlu0 %v1014_v26 }
 0x95d   :  { %v1016_v27 = vpop.xlane.xlu0 %1015 }
 0x95e   :  { %1351 = vrcp.f32 %v1016_v27 }
 0x968   :  { %v1352_v28 = vpop.eup %1351 }
 0x969   :  { %v1018_v29 = vmul.f32 %v1352_v28, %v1016_v27 }
 0x96b   :  { %v1019_v30 = vsub.f32 2.0, %v1018_v29 }
 0x96d   :  { %v1020_v31 = vmul.f32 %v1352_v28, %v1019_v30 }
 0x96f   :  { %v1021_v32 = vmul.f32 %v1350_v25, %v1020_v31 }
 0x971   :  { %1023 = vst [vmem:[%s1751_s9] sm:$0x1] %v1021_v32 }
 0x972   :  { %1058 = vsyncpa [#allocation5], 1 }

</bundles_post_ra>
